<compile_context>
chip_gen: v5e
topology: v5e:2x2
jax: 0.10.0
libtpu: 0.0.40
codegen_flags: <defaults>
</compile_context>

<pallas_src>
import jax
import jax.numpy as jnp
from jax.experimental import pallas as pl
from jax.experimental.pallas import tpu as pltpu

# Keep up to this many DMAs in flight (several DMA engines working; the copy
# is pure HBM bandwidth, so a handful is plenty on v5e/v6e/v7x alike).
_MAX_DMAS_IN_FLIGHT = 8
# Don't bother splitting into chunks smaller than this.
_MIN_CHUNK_BYTES = 1 << 20  # 1 MiB


def no_norm(x):
    """NoNorm.forward(x) == x.  Identity: no kernel, no HBM traffic."""
    return x


def _pick_lane_width(total_elems):
    """Largest multiple of 128 (capped at 4096) dividing the element count."""
    for lanes in (4096, 2048, 1024, 512, 256, 128):
        if total_elems % lanes == 0:
            return lanes
    return None


def _row_splits(n_rows, n_chunks):
    """Even static partition of [0, n_rows) into n_chunks contiguous ranges."""
    base, rem = divmod(n_rows, n_chunks)
    splits, start = [], 0
    for i in range(n_chunks):
        size = base + (1 if i < rem else 0)
        splits.append((start, start + size))
        start += size
    return tuple(splits)


def _make_dma_copy_kernel(row_splits):
    """Kernel body: start one HBM->HBM DMA per row chunk, then wait on all.

    Starting every copy before waiting keeps multiple DMA engines busy.  No
    VMEM staging, no grid, no per-step pipeline overhead; the output ref is
    written directly by the DMAs.
    """
    def kernel(x_ref, o_ref, sems):
        copies = []
        for idx, (r0, r1) in enumerate(row_splits):
            cp = pltpu.make_async_copy(
                x_ref.at[r0:r1, :], o_ref.at[r0:r1, :], sems.at[idx]
            )
            cp.start()
            copies.append(cp)
        for cp in copies:
            cp.wait()
    return kernel


def no_norm_copy(x):
    """Materialized identity copy via direct HBM->HBM DMA (no VMEM staging)."""
    orig_shape = x.shape
    total = int(x.size)
    if total == 0:
        return x  # nothing to copy

    # 2-D view of the contiguous buffer.  If the element count is a multiple
    # of 128 we pick a wide lane axis so chunking splits along rows; otherwise
    # the whole buffer is a single long row (a DMA copies raw bytes, so lane
    # alignment is irrelevant here — no padding / masked stores needed).
    lanes = _pick_lane_width(total)
    if lanes is None:
        n_rows, lanes = 1, total
    else:
        n_rows = total // lanes
    x2d = x.reshape(n_rows, lanes)

    nbytes = total * jnp.dtype(x.dtype).itemsize
    n_chunks = max(1, min(_MAX_DMAS_IN_FLIGHT, n_rows, nbytes // _MIN_CHUNK_BYTES))
    splits = _row_splits(n_rows, n_chunks)

    out2d = pl.pallas_call(
        _make_dma_copy_kernel(splits),
        out_shape=jax.ShapeDtypeStruct((n_rows, lanes), x2d.dtype),
        in_specs=[pl.BlockSpec(memory_space=pl.ANY)],    # raw HBM ref, no auto-DMA
        out_specs=pl.BlockSpec(memory_space=pl.ANY),     # DMAs write HBM directly
        scratch_shapes=[pltpu.SemaphoreType.DMA((n_chunks,))],
        # Purely memory-bound custom call: tell XLA so it can overlap neighbours.
        cost_estimate=pl.CostEstimate(
            flops=0, transcendentals=0, bytes_accessed=2 * int(nbytes)
        ),
    )(x2d)

    return out2d.reshape(orig_shape)


if __name__ == "__main__":
    key = jax.random.PRNGKey(0)
    x = jax.random.normal(key, (2, 4, 16, 16), dtype=jnp.float32)

    # Fast path: true NoNorm semantics — returns x unchanged, zero HBM traffic.
    y_fast = no_norm(x)
    assert y_fast is x

    # Direct-DMA copy path (2048 elems -> one (1, 2048) row, single DMA).
    y = no_norm_copy(x)
    jax.block_until_ready(y)
    assert y.shape == x.shape
    assert y.dtype == x.dtype
    assert bool(jnp.all(y == x))

    # Element count not a multiple of 128 -> copied as one long unpadded row;
    # still a single DMA, no lane-sparse layout or masked stores.
    x_odd = jax.random.normal(jax.random.PRNGKey(1), (2, 3, 5, 7), jnp.float32)
    y_odd = no_norm_copy(x_odd)
    jax.block_until_ready(y_odd)
    assert y_odd.shape == x_odd.shape
    assert bool(jnp.all(y_odd == x_odd))

    # Larger case exercising several DMAs in flight (4 MiB -> 4 chunks).
    x_big = jax.random.normal(jax.random.PRNGKey(2), (4, 256, 1024), jnp.float32)
    y_big = no_norm_copy(x_big)
    jax.block_until_ready(y_big)
    assert bool(jnp.all(y_big == x_big))

    print("KERNEL_OK")
</pallas_src>

<mosaic_0001>
module attributes {stable_mosaic.version = 11 : i64} {
  func.func @kernel(%arg0: memref<1x2048xf32, #tpu.memory_space<any>>, %arg1: memref<1x2048xf32, #tpu.memory_space<any>>, %arg2: memref<1x!tpu.dma_semaphore, #tpu.memory_space<semaphore_mem>>) attributes {dimension_semantics = [], scalar_prefetch = 0 : i64, scratch_operands = 1 : i64, tpu.core_type = #tpu.core_type<tc>} {
    %c0_i32 = arith.constant 0 : i32
    %c0_i32_0 = arith.constant 0 : i32
    %c0_i32_1 = arith.constant 0 : i32
    %0 = tpu.memref_slice %arg0[%c0_i32_0, %c0_i32_1] : memref<1x2048xf32, #tpu.memory_space<any>> -> memref<1x2048xf32, #tpu.memory_space<any>>
    %c0_i32_2 = arith.constant 0 : i32
    %c0_i32_3 = arith.constant 0 : i32
    %1 = tpu.memref_slice %arg1[%c0_i32_2, %c0_i32_3] : memref<1x2048xf32, #tpu.memory_space<any>> -> memref<1x2048xf32, #tpu.memory_space<any>>
    %2 = tpu.memref_slice %arg2[%c0_i32] : memref<1x!tpu.dma_semaphore, #tpu.memory_space<semaphore_mem>> -> memref<1x!tpu.dma_semaphore, #tpu.memory_space<semaphore_mem>>
    %3 = tpu.memref_squeeze %2 : memref<1x!tpu.dma_semaphore, #tpu.memory_space<semaphore_mem>> -> memref<!tpu.dma_semaphore, #tpu.memory_space<semaphore_mem>>
    tpu.enqueue_dma source(%0 : memref<1x2048xf32, #tpu.memory_space<any>>) target(%1 : memref<1x2048xf32, #tpu.memory_space<any>>) target_semaphore(%3 : memref<!tpu.dma_semaphore, #tpu.memory_space<semaphore_mem>>)
    %c0_i32_4 = arith.constant 0 : i32
    %c0_i32_5 = arith.constant 0 : i32
    %c0_i32_6 = arith.constant 0 : i32
    %4 = tpu.memref_slice %arg0[%c0_i32_5, %c0_i32_6] : memref<1x2048xf32, #tpu.memory_space<any>> -> memref<1x2048xf32, #tpu.memory_space<any>>
    %c0_i32_7 = arith.constant 0 : i32
    %c0_i32_8 = arith.constant 0 : i32
    %5 = tpu.memref_slice %arg1[%c0_i32_7, %c0_i32_8] : memref<1x2048xf32, #tpu.memory_space<any>> -> memref<1x2048xf32, #tpu.memory_space<any>>
    %6 = tpu.memref_slice %arg2[%c0_i32_4] : memref<1x!tpu.dma_semaphore, #tpu.memory_space<semaphore_mem>> -> memref<1x!tpu.dma_semaphore, #tpu.memory_space<semaphore_mem>>
    %7 = tpu.memref_squeeze %6 : memref<1x!tpu.dma_semaphore, #tpu.memory_space<semaphore_mem>> -> memref<!tpu.dma_semaphore, #tpu.memory_space<semaphore_mem>>
    tpu.wait_dma2 semaphore(%7 : memref<!tpu.dma_semaphore, #tpu.memory_space<semaphore_mem>>) src(%4 : memref<1x2048xf32, #tpu.memory_space<any>>) dst(%5 : memref<1x2048xf32, #tpu.memory_space<any>>)
    return
  }
}

</mosaic_0001>

<bundles_post_ra>
// kernel: tpu_custom_call.1
= control target key start
LH: loop header
LB: loop body
LE: loop exit
PB: predicated region body
PF: predicated region fallthrough
CT: control target
= control target key end

     0   :  { %s32_s12 = smov [#allocation2]   ;;  %s33_s13 = smov [#allocation3]   ;;  %s51_s0 = inlined_call_operand.hbm [shape: f32[1,2048], index: 0, kind: input, shape index: {}]   ;;  %s52_s1 = inlined_call_operand.hbm [shape: f32[1,2048], index: 1, kind: output, shape index: {}]  }
   0x1   :  { %s10_s8 = sshll.u32 %s51_s0, 4  ;;  %s12_s11 = sshll.u32 %s52_s1, 4  ;;  %s11_s8 = int_to_ptr.hbm [resolvable:$true] %s10_s8  ;;  %s13_s11 = int_to_ptr.hbm [resolvable:$true] %s12_s11 }
   0x2   :  { %s34_s14 = smov 0  }
   0x3   :  { %16 = dma.general %s11_s8, 256, %s13_s11, %s32_s12, %s33_s13, [#allocation4], %s34_s14, 0  }
   0x4   :  { %30 = dma.done.wait [#allocation2], 256 }
   0x5   :  { %31 = vsyncadd [#allocation2], 4294967040 }
   0x6   :  { %20 = vsyncmov [#allocation2] }
   0x9   :  { %s21_s15 = vpop.sfrf %20 }
   0xa   :  { %p26_p0 = scmp.ne.s32.totalorder %s21_s15, 0 }
   0xc   :  { %25 = shalt.err (%p26_p0)  }

</bundles_post_ra>
